<compile_context>
chip_gen: v5e
topology: v5e:2x2
jax: 0.10.0
libtpu: 0.0.40
codegen_flags: <defaults>
</compile_context>

<pallas_src>
import functools

import jax
import jax.numpy as jnp
from jax.experimental import pallas as pl
from jax.experimental.pallas import tpu as pltpu


def _round_up(x, m):
    return ((x + m - 1) // m) * m


def embedding_w_kernel(emb_ref, wp_ref, wcat_ref, bcat_ref, o_ref):
    """One row-tile: projection + all highway layers, fused.

    emb_ref : (tm, Ep)       bf16, gathered word vectors (E zero-padded to Ep)
    wp_ref  : (Ep, Hp)       bf16, projection weight (y = x @ Wp), zero-padded
    wcat_ref: (L, Hp, 2Hp)   bf16, [transform | gate] weights, zero-padded
    bcat_ref: (L, 1, 2Hp)    f32,  [transform | gate] biases, zero-padded
    o_ref   : (tm, Hp)       f32,  output rows (padded cols stay exactly 0)
    """
    Hp = o_ref.shape[-1]
    num_layers = wcat_ref.shape[0]

    # Bias-free projection on the MXU: bf16 operands, f32 accumulation.
    x = jnp.dot(emb_ref[...], wp_ref[...], preferred_element_type=jnp.float32)

    # Highway layers. L is a trace-time constant -> static unroll so the
    # scheduler can overlap layer l+1's MXU pushes with layer l's VPU/EUP work.
    # Matmul operands are cast to bf16; activation math stays f32.
    for l in range(num_layers):
        pre = (jnp.dot(x.astype(wcat_ref.dtype), wcat_ref[l],
                       preferred_element_type=jnp.float32)
               + bcat_ref[l])                  # (tm, 2Hp): [t_pre | g_pre]
        t = jnp.maximum(pre[:, :Hp], 0.0)      # relu(transform)
        g = jax.nn.sigmoid(pre[:, Hp:])        # sigmoid(gate)   (EUP)
        x = x + g * (t - x)                    # == g*t + (1-g)*x
        # Padded cols: pre == 0 -> t == 0, g == 0.5, x_pad == 0 -> stays 0.

    o_ref[...] = x.astype(o_ref.dtype)


@functools.partial(jax.jit, static_argnames=("tm",))
def embedding_w_forward(w_idxs, word_vectors, wp, wt, bt, wg, bg, *, tm=512):
    """w_idxs: (B, S) int32.  Returns (B, S, H) float32.  Eval-mode forward."""
    B, S = w_idxs.shape
    _, E = word_vectors.shape
    H = wp.shape[1]
    L = wt.shape[0]

    # ---- lane-align E and H to multiples of 128 (zero padding is neutral) ----
    Ep = _round_up(E, 128)
    Hp = _round_up(H, 128)

    wv_p = jnp.pad(word_vectors, ((0, 0), (0, Ep - E))).astype(jnp.bfloat16)
    wp_p = jnp.pad(wp, ((0, Ep - E), (0, Hp - H))).astype(jnp.bfloat16)
    wt_p = jnp.pad(wt, ((0, 0), (0, Hp - H), (0, Hp - H)))
    wg_p = jnp.pad(wg, ((0, 0), (0, Hp - H), (0, Hp - H)))
    wcat = jnp.concatenate([wt_p, wg_p], axis=-1).astype(jnp.bfloat16)  # (L,Hp,2Hp)
    bt_p = jnp.pad(bt, ((0, 0), (0, Hp - H)))
    bg_p = jnp.pad(bg, ((0, 0), (0, Hp - H)))
    bcat = jnp.concatenate([bt_p, bg_p], axis=-1).reshape(L, 1, 2 * Hp)  # f32

    # ---- row tiling: pad the int32 indices (cheap), never the gathered emb ---
    rows = B * S
    rows8 = _round_up(rows, 8)
    tm_eff = min(tm, rows8)
    if tm_eff == rows8 and rows8 >= 16:
        # Keep >= 2 grid steps so the "parallel" axis can be split across the
        # two TensorCores on v7x (no-op on single-TC v5e/v6e).
        tm_eff = _round_up(rows8 // 2, 8)
    rows_p = _round_up(rows, tm_eff)

    idx = w_idxs.reshape(-1)
    if rows_p != rows:
        idx = jnp.pad(idx, (0, rows_p - rows))          # pad with index 0

    # Embedding gather (memory-bound) in plain JAX; bf16 halves its HBM bytes.
    emb = jnp.take(wv_p, idx, axis=0)                   # (rows_p, Ep) bf16
    # TODO(synk): F.dropout(emb, drop_prob, training) is identity in eval mode;
    # a training-mode version would use pltpu.prng_seed / stateful_bernoulli.
    # TODO(synk): the gathered emb still round-trips HBM; next step is
    # allow_input_fusion on operand 0 or a scalar-prefetch DMA gather.

    grid = (rows_p // tm_eff,)

    # VMEM budget: double-buffered emb + out tiles plus one copy of the (tiny)
    # resident weights; leave 2x headroom, cap well under v7x's 64 MiB physical.
    vmem_need = (2 * tm_eff * Ep * 2            # emb bf16, double-buffered
                 + 2 * tm_eff * Hp * 4          # out f32, double-buffered
                 + Ep * Hp * 2                  # proj weight
                 + L * Hp * 2 * Hp * 2          # highway weights
                 + L * 2 * Hp * 4)              # highway biases
    vmem_limit = int(min(max(2 * vmem_need, 16 * 2**20), 48 * 2**20))

    out = pl.pallas_call(
        embedding_w_kernel,
        out_shape=jax.ShapeDtypeStruct((rows_p, Hp), jnp.float32),
        grid_spec=pltpu.PrefetchScalarGridSpec(
            num_scalar_prefetch=0,
            grid=grid,
            in_specs=[
                pl.BlockSpec((tm_eff, Ep), lambda i: (i, 0)),        # emb rows
                pl.BlockSpec((Ep, Hp), lambda i: (0, 0)),            # proj weight
                pl.BlockSpec((L, Hp, 2 * Hp), lambda i: (0, 0, 0)),  # Wt|Wg fused
                pl.BlockSpec((L, 1, 2 * Hp), lambda i: (0, 0, 0)),   # bt|bg fused
            ],
            out_specs=pl.BlockSpec((tm_eff, Hp), lambda i: (i, 0)),
        ),
        compiler_params=pltpu.CompilerParams(
            dimension_semantics=("parallel",),
            vmem_limit_bytes=vmem_limit,
        ),
    )(emb, wp_p, wcat, bcat)

    # Strip row and lane padding before the (B, S, H) reshape.
    return out[:rows, :H].reshape(B, S, H)


def reference_embedding_w(w_idxs, word_vectors, wp, wt, bt, wg, bg):
    """Pure-JAX f32 reference mirroring the PyTorch forward (eval mode)."""
    x = word_vectors[w_idxs] @ wp
    for l in range(wt.shape[0]):
        g = jax.nn.sigmoid(x @ wg[l] + bg[l])
        t = jax.nn.relu(x @ wt[l] + bt[l])
        x = g * t + (1.0 - g) * x
    return x


if __name__ == "__main__":
    num_layers = 2
    vocab = 50
    embed_dim = 64          # word-vector dimension E (padded to 128 internally)
    hidden = 32             # H (padded to 128 internally)
    batch, seq = 2, 8

    key = jax.random.PRNGKey(0)
    k_wv, k_idx, k_wp, k_wt, k_bt, k_wg, k_bg = jax.random.split(key, 7)

    word_vectors = jax.random.normal(k_wv, (vocab, embed_dim), dtype=jnp.float32)
    w_idxs = jax.random.randint(k_idx, (batch, seq), 0, vocab, dtype=jnp.int32)

    # nn.Linear-style init (uniform +/- 1/sqrt(fan_in)); weights stored already
    # transposed so the kernel computes y = x @ W + b directly.
    bound_p = 1.0 / jnp.sqrt(jnp.float32(embed_dim))
    wp = jax.random.uniform(k_wp, (embed_dim, hidden),
                            minval=-bound_p, maxval=bound_p, dtype=jnp.float32)
    bound_h = 1.0 / jnp.sqrt(jnp.float32(hidden))
    wt = jax.random.uniform(k_wt, (num_layers, hidden, hidden),
                            minval=-bound_h, maxval=bound_h, dtype=jnp.float32)
    bt = jax.random.uniform(k_bt, (num_layers, hidden),
                            minval=-bound_h, maxval=bound_h, dtype=jnp.float32)
    wg = jax.random.uniform(k_wg, (num_layers, hidden, hidden),
                            minval=-bound_h, maxval=bound_h, dtype=jnp.float32)
    bg = jax.random.uniform(k_bg, (num_layers, hidden),
                            minval=-bound_h, maxval=bound_h, dtype=jnp.float32)

    out = embedding_w_forward(w_idxs, word_vectors, wp, wt, bt, wg, bg, tm=512)
    out = jax.block_until_ready(out)

    ref = reference_embedding_w(w_idxs, word_vectors, wp, wt, bt, wg, bg)
    assert out.shape == (batch, seq, hidden) and out.dtype == jnp.float32
    # bf16 embedding/weight path vs f32 reference -> loosened tolerance.
    assert jnp.allclose(out, ref, atol=2e-2, rtol=2e-2), "mismatch vs reference"

    print("KERNEL_OK")
</pallas_src>

<mosaic_0001>
module attributes {stable_mosaic.version = 11 : i64} {
  func.func @embedding_w_kernel(%arg0: i32, %arg1: memref<8x128xbf16, #tpu.memory_space<vmem>>, %arg2: memref<128x128xbf16, #tpu.memory_space<vmem>>, %arg3: memref<2x128x256xbf16, #tpu.memory_space<vmem>>, %arg4: memref<2x1x256xf32, #tpu.memory_space<vmem>>, %arg5: memref<8x128xf32, #tpu.memory_space<vmem>>) attributes {dimension_semantics = [#tpu.dimension_semantics<parallel>], iteration_bounds = array<i64: 2>, scalar_prefetch = 0 : i64, scratch_operands = 0 : i64, tpu.core_type = #tpu.core_type<tc>, window_params = [{transform_indices = @transform_0, window_bounds = array<i64: 8, 128>}, {pipeline_mode = #tpu.pipeline_mode<synchronous>, transform_indices = @transform_1, window_bounds = array<i64: 128, 128>}, {pipeline_mode = #tpu.pipeline_mode<synchronous>, transform_indices = @transform_2, window_bounds = array<i64: 2, 128, 256>}, {pipeline_mode = #tpu.pipeline_mode<synchronous>, transform_indices = @transform_3, window_bounds = array<i64: 2, 1, 256>}, {transform_indices = @transform_4, window_bounds = array<i64: 8, 128>}]} {
    %c0 = arith.constant 0 : index
    %c0_0 = arith.constant 0 : index
    %0 = vector.load %arg1[%c0, %c0_0] : memref<8x128xbf16, #tpu.memory_space<vmem>>, vector<8x128xbf16>
    %c0_1 = arith.constant 0 : index
    %c0_2 = arith.constant 0 : index
    %1 = vector.load %arg2[%c0_1, %c0_2] : memref<128x128xbf16, #tpu.memory_space<vmem>>, vector<128x128xbf16>
    %cst = arith.constant dense<0.000000e+00> : vector<8x128xf32>
    %2 = tpu.matmul %0, %1, %cst {dimension_numbers = #tpu.dot_dimension_numbers<[1], [0], [0], [1], [0, 0, 1, 1], [], []>} : vector<8x128xbf16>, vector<128x128xbf16>, vector<8x128xf32> -> vector<8x128xf32>
    %3 = arith.truncf %2 : vector<8x128xf32> to vector<8x128xbf16>
    %c0_3 = arith.constant 0 : index
    %c0_4 = arith.constant 0 : index
    %c0_5 = arith.constant 0 : index
    %4 = vector.load %arg3[%c0_3, %c0_4, %c0_5] : memref<2x128x256xbf16, #tpu.memory_space<vmem>>, vector<1x128x256xbf16>
    %5 = vector.shape_cast %4 : vector<1x128x256xbf16> to vector<128x256xbf16>
    %cst_6 = arith.constant dense<0.000000e+00> : vector<8x256xf32>
    %6 = tpu.matmul %3, %5, %cst_6 {dimension_numbers = #tpu.dot_dimension_numbers<[1], [0], [0], [1], [0, 0, 1, 1], [], []>} : vector<8x128xbf16>, vector<128x256xbf16>, vector<8x256xf32> -> vector<8x256xf32>
    %c0_7 = arith.constant 0 : index
    %c0_8 = arith.constant 0 : index
    %c0_9 = arith.constant 0 : index
    %7 = vector.load %arg4[%c0_7, %c0_8, %c0_9] : memref<2x1x256xf32, #tpu.memory_space<vmem>>, vector<1x1x256xf32>
    %8 = vector.shape_cast %7 : vector<1x1x256xf32> to vector<1x256xf32>
    %9 = vector.broadcast %8 : vector<1x256xf32> to vector<8x256xf32>
    %10 = arith.addf %6, %9 : vector<8x256xf32>
    %11 = vector.extract_strided_slice %10 {offsets = [0, 0], sizes = [8, 128], strides = [1, 1]} : vector<8x256xf32> to vector<8x128xf32>
    %cst_10 = arith.constant 0.000000e+00 : f32
    %12 = vector.broadcast %cst_10 : f32 to vector<8x128xf32>
    %13 = arith.maximumf %11, %12 : vector<8x128xf32>
    %14 = vector.extract_strided_slice %10 {offsets = [0, 128], sizes = [8, 128], strides = [1, 1]} : vector<8x256xf32> to vector<8x128xf32>
    %15 = arith.negf %14 : vector<8x128xf32>
    %16 = math.exp %15 : vector<8x128xf32>
    %cst_11 = arith.constant 1.000000e+00 : f32
    %17 = vector.broadcast %cst_11 : f32 to vector<8x128xf32>
    %18 = arith.addf %17, %16 : vector<8x128xf32>
    %19 = arith.divf %17, %18 : vector<8x128xf32>
    %20 = arith.subf %13, %2 : vector<8x128xf32>
    %21 = arith.mulf %19, %20 : vector<8x128xf32>
    %22 = arith.addf %2, %21 : vector<8x128xf32>
    %23 = arith.truncf %22 : vector<8x128xf32> to vector<8x128xbf16>
    %c1 = arith.constant 1 : index
    %c0_12 = arith.constant 0 : index
    %c0_13 = arith.constant 0 : index
    %24 = vector.load %arg3[%c1, %c0_12, %c0_13] : memref<2x128x256xbf16, #tpu.memory_space<vmem>>, vector<1x128x256xbf16>
    %25 = vector.shape_cast %24 : vector<1x128x256xbf16> to vector<128x256xbf16>
    %cst_14 = arith.constant dense<0.000000e+00> : vector<8x256xf32>
    %26 = tpu.matmul %23, %25, %cst_14 {dimension_numbers = #tpu.dot_dimension_numbers<[1], [0], [0], [1], [0, 0, 1, 1], [], []>} : vector<8x128xbf16>, vector<128x256xbf16>, vector<8x256xf32> -> vector<8x256xf32>
    %c1_15 = arith.constant 1 : index
    %c0_16 = arith.constant 0 : index
    %c0_17 = arith.constant 0 : index
    %27 = vector.load %arg4[%c1_15, %c0_16, %c0_17] : memref<2x1x256xf32, #tpu.memory_space<vmem>>, vector<1x1x256xf32>
    %28 = vector.shape_cast %27 : vector<1x1x256xf32> to vector<1x256xf32>
    %29 = vector.broadcast %28 : vector<1x256xf32> to vector<8x256xf32>
    %30 = arith.addf %26, %29 : vector<8x256xf32>
    %31 = vector.extract_strided_slice %30 {offsets = [0, 0], sizes = [8, 128], strides = [1, 1]} : vector<8x256xf32> to vector<8x128xf32>
    %cst_18 = arith.constant 0.000000e+00 : f32
    %32 = vector.broadcast %cst_18 : f32 to vector<8x128xf32>
    %33 = arith.maximumf %31, %32 : vector<8x128xf32>
    %34 = vector.extract_strided_slice %30 {offsets = [0, 128], sizes = [8, 128], strides = [1, 1]} : vector<8x256xf32> to vector<8x128xf32>
    %35 = arith.negf %34 : vector<8x128xf32>
    %36 = math.exp %35 : vector<8x128xf32>
    %cst_19 = arith.constant 1.000000e+00 : f32
    %37 = vector.broadcast %cst_19 : f32 to vector<8x128xf32>
    %38 = arith.addf %37, %36 : vector<8x128xf32>
    %39 = arith.divf %37, %38 : vector<8x128xf32>
    %40 = arith.subf %33, %22 : vector<8x128xf32>
    %41 = arith.mulf %39, %40 : vector<8x128xf32>
    %42 = arith.addf %22, %41 : vector<8x128xf32>
    %c0_20 = arith.constant 0 : index
    %c0_21 = arith.constant 0 : index
    %43 = vector.load %arg5[%c0_20, %c0_21] : memref<8x128xf32, #tpu.memory_space<vmem>>, vector<8x128xf32>
    tpu.vector_store %arg5[%c0_20, %c0_21], %42 {strides = array<i32>} : memref<8x128xf32, #tpu.memory_space<vmem>>, vector<8x128xf32>,
    return
  }
  func.func @transform_0(%arg0: i32) -> (i32, i32) {
    %c0_i32 = arith.constant 0 : i32
    %c0_i32_0 = arith.constant 0 : i32
    return %arg0, %c0_i32 : i32, i32
  }
  func.func @transform_1(%arg0: i32) -> (i32, i32) {
    %c0_i32 = arith.constant 0 : i32
    %c0_i32_0 = arith.constant 0 : i32
    %c0_i32_1 = arith.constant 0 : i32
    return %c0_i32, %c0_i32_0 : i32, i32
  }
  func.func @transform_2(%arg0: i32) -> (i32, i32, i32) {
    %c0_i32 = arith.constant 0 : i32
    %c0_i32_0 = arith.constant 0 : i32
    %c0_i32_1 = arith.constant 0 : i32
    %c0_i32_2 = arith.constant 0 : i32
    return %c0_i32, %c0_i32_0, %c0_i32_1 : i32, i32, i32
  }
  func.func @transform_3(%arg0: i32) -> (i32, i32, i32) {
    %c0_i32 = arith.constant 0 : i32
    %c0_i32_0 = arith.constant 0 : i32
    %c0_i32_1 = arith.constant 0 : i32
    %c0_i32_2 = arith.constant 0 : i32
    return %c0_i32, %c0_i32_0, %c0_i32_1 : i32, i32, i32
  }
  func.func @transform_4(%arg0: i32) -> (i32, i32) {
    %c0_i32 = arith.constant 0 : i32
    %c0_i32_0 = arith.constant 0 : i32
    return %arg0, %c0_i32 : i32, i32
  }
}

</mosaic_0001>

<bundles_post_ra>
// kernel: embedding_w_forward.1
= control target key start
LH: loop header
LB: loop body
LE: loop exit
PB: predicated region body
PF: predicated region fallthrough
CT: control target
= control target key end

     0   :  { %s908_s15 = smov 0   ;;  %s1161_s0 = inlined_call_operand.vmem [shape: bf16[16,128], index: 0, kind: input, shape index: {}]   ;;  %s1162_s1 = inlined_call_operand.vmem [shape: bf16[128,128], index: 1, kind: input, shape index: {}]   ;;  %s1163_s2 = inlined_call_operand.vmem [shape: bf16[2,128,256], index: 2, kind: input, shape index: {}]   ;;  %s1164_s3 = inlined_call_operand.vmem [shape: f32[2,1,256], index: 3, kind: input, shape index: {}]   ;;  %s1165_s4 = inlined_call_operand.vmem [shape: f32[16,128], index: 4, kind: output, shape index: {}]  }
   0x1 LB: > { %s631_s16 = sadd.s32 4294967295, %s881_s15   ;;  %p635_p0 = scmp.ge.s32.totalorder %s881_s15, 1  ;;  %s881_s15 = sphi %s908_s15, %s14_s15  }
   0x2   : > { %p161_p1 = scmp.lt.s32.totalorder %s881_s15, 3 }
   0x4   : > { %p162_p2 = pnand %p635_p0, %p161_p1 }
   0x5   : > { %p185_p3 = scmp.lt.s32.totalorder (!%p162_p2), %s631_s16, 1 }
   0x6   : > { %165 = sbr.rel (%p162_p2) target bundleno = 500 (0x1f4), region = 36 }
   0xb   : > { %v826_v0 = vld [vmem:[%s1162_s1 + $0x38] sm:$0xff]  ;;  %v825_v1 = vld [vmem:[%s1162_s1 + $0x30] sm:$0xff]  ;;  %v720_v8 = vld [vmem:[%s1163_s2 + $0x60] sm:$0xf]  ;;  %s1167_s16 = smov (!%p185_p3, %s631_s16), 1 }
   0xc   : > { %258 = vmatpush.bf16.msra.mxu0 %v826_v0  ;;  %v728_v2 = vld [vmem:[%s1163_s2 + $0x70] sm:$0xf]  ;;  %v842_v3 = vld [vmem:[%s1163_s2 + $0x74] sm:$0xf0]  ;;  %v841_v4 = vld [vmem:[%s1163_s2 + $0x74] sm:$0xf] }
   0xd   : > { %v730_v5 = vld [vmem:[%s1163_s2 + $0x78] sm:$0xf0]  ;;  %v729_v6 = vor.u32 %v842_v3, %v728_v2  ;;  %v840_v9 = vld [vmem:[%s1163_s2 + $0x64] sm:$0xf0]  ;;  %v839_v10 = vld [vmem:[%s1163_s2 + $0x64] sm:$0xf] }
   0xe   : > { %v733_v7 = vor.u32 %v841_v4, %v730_v5  ;;  %v722_v11 = vld [vmem:[%s1163_s2 + $0x68] sm:$0xf0]  ;;  %v721_v13 = vor.u32 %v840_v9, %v720_v8  ;;  %v712_v15 = vld [vmem:[%s1163_s2 + $0x50] sm:$0xf]  ;;  %v838_v16 = vld [vmem:[%s1163_s2 + $0x54] sm:$0xf0] }
   0xf   : > { %v824_v12 = vld [vmem:[%s1162_s1 + $0x28] sm:$0xff]  ;;  %374 = vmatpush.bf16.msra.mxu1 %v729_v6  ;;  %v725_v14 = vor.u32 %v839_v10, %v722_v11  ;;  %v837_v17 = vld [vmem:[%s1163_s2 + $0x54] sm:$0xf]  ;;  %v714_v18 = vld [vmem:[%s1163_s2 + $0x58] sm:$0xf0]  ;;  %v713_v20 = vor.u32 %v838_v16, %v712_v15  ;;  %s636_s9 = sshll.u32 %s1167_s16, 2 }
  0x10   : > { %259 = vmatpush.bf16.msra.mxu0 %v825_v1  ;;  %387 = vmatpush.bf16.msra.mxu2 %v733_v7  ;;  %v823_v19 = vld [vmem:[%s1162_s1 + $0x20] sm:$0xff]  ;;  %v717_v21 = vor.u32 %v837_v17, %v714_v18  ;;  %v836_v23 = vld [vmem:[%s1163_s2 + $0x44] sm:$0xf0]  ;;  %v706_v25 = vld [vmem:[%s1163_s2 + $0x48] sm:$0xf0]  ;;  %s188_s20 = scalar_lea.vmem %s1161_s0, %s636_s9  ;;  %s637_s25 = sshll.u32 %s1167_s16, 3 }
  0x11   : > { %v704_v22 = vld [vmem:[%s1163_s2 + $0x40] sm:$0xf]  ;;  %v835_v24 = vld [vmem:[%s1163_s2 + $0x44] sm:$0xf]  ;;  %v822_v26 = vld [vmem:[%s1162_s1 + $0x18] sm:$0xff]  ;;  %s192_s28 = scalar_lea.vmem %s1165_s4, %s637_s25 }
  0x12   : > { %v705_v27 = vor.u32 %v836_v23, %v704_v22  ;;  %v709_v28 = vor.u32 %v835_v24, %v706_v25  ;;  %v696_v29 = vld [vmem:[%s1163_s2 + $0x30] sm:$0xf]  ;;  %v834_v30 = vld [vmem:[%s1163_s2 + $0x34] sm:$0xf0]  ;;  %v833_v31 = vld [vmem:[%s1163_s2 + $0x34] sm:$0xf] }
  0x13   : > { %375 = vmatpush.bf16.msra.mxu1 %v721_v13  ;;  %v698_v32 = vld [vmem:[%s1163_s2 + $0x38] sm:$0xf0]  ;;  %v821_v33 = vld [vmem:[%s1162_s1 + $0x10] sm:$0xff]  ;;  %v697_v34 = vor.u32 %v834_v30, %v696_v29  ;;  %v688_v36 = vld [vmem:[%s1163_s2 + $0x20] sm:$0xf] }
  0x14   : > { %260 = vmatpush.bf16.msra.mxu0 %v824_v12  ;;  %388 = vmatpush.bf16.msra.mxu2 %v725_v14  ;;  %v701_v35 = vor.u32 %v833_v31, %v698_v32  ;;  %v832_v37 = vld [vmem:[%s1163_s2 + $0x24] sm:$0xf0]  ;;  %v831_v38 = vld [vmem:[%s1163_s2 + $0x24] sm:$0xf]  ;;  %v690_v39 = vld [vmem:[%s1163_s2 + $0x28] sm:$0xf0] }
  0x15   : > { %v820_v40 = vld [vmem:[%s1162_s1 + $0x8] sm:$0xff]  ;;  %v689_v41 = vor.u32 %v832_v37, %v688_v36  ;;  %v693_v42 = vor.u32 %v831_v38, %v690_v39  ;;  %v680_v43 = vld [vmem:[%s1163_s2 + $0x10] sm:$0xf]  ;;  %v830_v44 = vld [vmem:[%s1163_s2 + $0x14] sm:$0xf0] }
  0x16   : > { %v829_v45 = vld [vmem:[%s1163_s2 + $0x14] sm:$0xf]  ;;  %v682_v46 = vld [vmem:[%s1163_s2 + $0x18] sm:$0xf0]  ;;  %v819_v47 = vld [vmem:[%s1162_s1] sm:$0xff]  ;;  %v681_v48 = vor.u32 %v830_v44, %v680_v43 }
  0x17   : > { %376 = vmatpush.bf16.msra.mxu1 %v713_v20  ;;  %v685_v49 = vor.u32 %v829_v45, %v682_v46  ;;  %v193_v50 = vld [vmem:[%s188_s20] sm:$0xf]  ;;  %v828_v52 = vld [vmem:[%s1163_s2 + $0x4] sm:$0xf0]  ;;  %v827_v53 = vld [vmem:[%s1163_s2 + $0x4] sm:$0xf] }
  0x18   : > { %261 = vmatpush.bf16.msra.mxu0 %v823_v19  ;;  %389 = vmatpush.bf16.msra.mxu2 %v717_v21  ;;  %v672_v51 = vld [vmem:[%s1163_s2] sm:$0xf]  ;;  %v674_v55 = vld [vmem:[%s1163_s2 + $0x8] sm:$0xf0]  ;;  %v810_v60 = vld [vmem:[%s1163_s2 + $0xf0] sm:$0xf] }
  0x19   : > { %v673_v54 = vor.u32 %v828_v52, %v672_v51  ;;  %v677_v56 = vor.u32 %v827_v53, %v674_v55  ;;  %v858_v61 = vld [vmem:[%s1163_s2 + $0xf4] sm:$0xf0]  ;;  %v857_v62 = vld [vmem:[%s1163_s2 + $0xf4] sm:$0xf]  ;;  %v812_v0 = vld [vmem:[%s1163_s2 + $0xf8] sm:$0xf0] }
  0x1a   : > { %v811_v63 = vor.u32 %v858_v61, %v810_v60  ;;  %v815_v1 = vor.u32 %v857_v62, %v812_v0  ;;  %v802_v2 = vld [vmem:[%s1163_s2 + $0xe0] sm:$0xf]  ;;  %v856_v3 = vld [vmem:[%s1163_s2 + $0xe4] sm:$0xf0]  ;;  %v855_v4 = vld [vmem:[%s1163_s2 + $0xe4] sm:$0xf] }
  0x1b   : > { %377 = vmatpush.bf16.msra.mxu1 %v705_v27  ;;  %v803_v5 = vor.u32 %v856_v3, %v802_v2  ;;  %v804_v6 = vld [vmem:[%s1163_s2 + $0xe8] sm:$0xf0]  ;;  %v794_v8 = vld [vmem:[%s1163_s2 + $0xd0] sm:$0xf]  ;;  %v854_v9 = vld [vmem:[%s1163_s2 + $0xd4] sm:$0xf0] }
  0x1c   : > { %262 = vmatpush.bf16.msra.mxu0 %v822_v26  ;;  %390 = vmatpush.bf16.msra.mxu2 %v709_v28  ;;  %v807_v7 = vor.u32 %v855_v4, %v804_v6  ;;  %v853_v10 = vld [vmem:[%s1163_s2 + $0xd4] sm:$0xf]  ;;  %v795_v11 = vor.u32 %v854_v9, %v794_v8  ;;  %v796_v12 = vld [vmem:[%s1163_s2 + $0xd8] sm:$0xf0]  ;;  %v786_v14 = vld [vmem:[%s1163_s2 + $0xc0] sm:$0xf] }
  0x1d   : > { %528 = vmatpush.bf16.msra.mxu3 %v811_v63  ;;  %v799_v13 = vor.u32 %v853_v10, %v796_v12  ;;  %v852_v15 = vld [vmem:[%s1163_s2 + $0xc4] sm:$0xf0]  ;;  %v851_v16 = vld [vmem:[%s1163_s2 + $0xc4] sm:$0xf]  ;;  %v788_v18 = vld [vmem:[%s1163_s2 + $0xc8] sm:$0xf0] }
  0x1e   : > { %v787_v17 = vor.u32 %v852_v15, %v786_v14  ;;  %v791_v19 = vor.u32 %v851_v16, %v788_v18  ;;  %v778_v20 = vld [vmem:[%s1163_s2 + $0xb0] sm:$0xf]  ;;  %v850_v21 = vld [vmem:[%s1163_s2 + $0xb4] sm:$0xf0]  ;;  %v849_v22 = vld [vmem:[%s1163_s2 + $0xb4] sm:$0xf] }
  0x1f   : > { %378 = vmatpush.bf16.msra.mxu1 %v697_v34  ;;  %v779_v23 = vor.u32 %v850_v21, %v778_v20  ;;  %v780_v24 = vld [vmem:[%s1163_s2 + $0xb8] sm:$0xf0]  ;;  %v770_v26 = vld [vmem:[%s1163_s2 + $0xa0] sm:$0xf]  ;;  %v848_v27 = vld [vmem:[%s1163_s2 + $0xa4] sm:$0xf0] }
  0x20   : > { %263 = vmatpush.bf16.msra.mxu0 %v821_v33  ;;  %391 = vmatpush.bf16.msra.mxu2 %v701_v35  ;;  %v783_v25 = vor.u32 %v849_v22, %v780_v24  ;;  %v847_v28 = vld [vmem:[%s1163_s2 + $0xa4] sm:$0xf]  ;;  %v771_v29 = vor.u32 %v848_v27, %v770_v26  ;;  %v772_v30 = vld [vmem:[%s1163_s2 + $0xa8] sm:$0xf0]  ;;  %v762_v31 = vld [vmem:[%s1163_s2 + $0x90] sm:$0xf] }
  0x21   : > { %529 = vmatpush.bf16.msra.mxu3 %v803_v5  ;;  %v846_v32 = vld [vmem:[%s1163_s2 + $0x94] sm:$0xf0]  ;;  %v775_v33 = vor.u32 %v847_v28, %v772_v30  ;;  %v845_v34 = vld [vmem:[%s1163_s2 + $0x94] sm:$0xf]  ;;  %v764_v35 = vld [vmem:[%s1163_s2 + $0x98] sm:$0xf0] }
  0x22   : > { %v763_v37 = vor.u32 %v846_v32, %v762_v31  ;;  %v767_v38 = vor.u32 %v845_v34, %v764_v35  ;;  %v754_v39 = vld [vmem:[%s1163_s2 + $0x80] sm:$0xf]  ;;  %v756_v43 = vld [vmem:[%s1163_s2 + $0x88] sm:$0xf0] }
  0x23   : > { %379 = vmatpush.bf16.msra.mxu1 %v689_v41  ;;  %v288_v41 = vld [vmem:[%s1164_s3] sm:$0x3]  ;;  %v751_v8 = vld [vmem:[%s1164_s3 + $0x2] sm:$0x3] }
  0x24   : > { %264 = vmatpush.bf16.msra.mxu0 %v820_v40  ;;  %392 = vmatpush.bf16.msra.mxu2 %v693_v42  ;;  %v844_v40 = vld [vmem:[%s1163_s2 + $0x84] sm:$0xf0]  ;;  %v843_v42 = vld [vmem:[%s1163_s2 + $0x84] sm:$0xf]  ;;  %v291_v44 = vperm.slane %v288_v41, 1  ;;  %v445_v9 = vperm.slane %v751_v8, 1 }
  0x25   : > { %530 = vmatpush.bf16.msra.mxu3 %v795_v11  ;;  %v755_v45 = vor.u32 %v844_v40, %v754_v39  ;;  %v759_v46 = vor.u32 %v843_v42, %v756_v43 }
  0x27   : > { %380 = vmatpush.bf16.msra.mxu1 %v681_v48 }
  0x28   : > { %265 = vmatpush.bf16.msra.mxu0 %v819_v47  ;;  %393 = vmatpush.bf16.msra.mxu2 %v685_v49 }
  0x29   : > { %531 = vmatpush.bf16.msra.mxu3 %v787_v17 }
  0x2b   : > { %266 = vmatmul.bf16.vlgmr.msra.gmra.mxu0 %v193_v50  ;;  %381 = vmatpush.bf16.msra.mxu1 %v673_v54  ;;  %v290_v54 = vperm.slane %v288_v41, 0 }
  0x2c   : > { %394 = vmatpush.bf16.msra.mxu2 %v677_v56  ;;  %541 = vmatpush.bf16.msrb.mxu0 %v815_v1 }
  0x2d   : > { %532 = vmatpush.bf16.msra.mxu3 %v779_v23 }
  0x30   : > { %542 = vmatpush.bf16.msrb.mxu0 %v807_v7 }
  0x31   : > { %533 = vmatpush.bf16.msra.mxu3 %v771_v29 }
  0x34   : > { %543 = vmatpush.bf16.msrb.mxu0 %v799_v13 }
  0x35   : > { %534 = vmatpush.bf16.msra.mxu3 %v763_v37 }
  0x38   : > { %544 = vmatpush.bf16.msrb.mxu0 %v791_v19 }
  0x39   : > { %535 = vmatpush.bf16.msra.mxu3 %v755_v45 }
  0x3c   : > { %545 = vmatpush.bf16.msrb.mxu0 %v783_v25 }
  0x40   : > { %546 = vmatpush.bf16.msrb.mxu0 %v775_v33 }
  0x44   : > { %547 = vmatpush.bf16.msrb.mxu0 %v767_v38 }
  0x48   : > { %548 = vmatpush.bf16.msrb.mxu0 %v759_v46 }
  0xa8   : > { %v1046_v57 = vpop.f32.mrf.mxu0 }
  0xa9   : > { %v271_v58 = vpack.c.bf16 %v1046_v57, %v1046_v57 }
  0xab   : > { %382 = vmatmul.bf16.vlgmr.msra.gmra.mxu1 %v271_v58  ;;  %395 = vmatmul.bf16.vlgmr.msra.gmra.mxu2 %v271_v58 }
  0xb0   : > { %v269_v59 = vpop.f32.mrf.mxu0 }
 0x128   : > { %v383_v36 = vpop.f32.mrf.mxu1 }
 0x129   : > { %v384_v56 = vadd.f32 %v383_v36, %v290_v54 }
 0x12b   : > { %v400_v61 = vmax.f32 %v384_v56, 0.0 }
 0x12d   : > { %v420_v2 = vsub.f32 %v400_v61, %v1046_v57 }
 0x12e   : > { %v396_v47 = vpop.f32.mrf.mxu2 }
 0x12f   : > { %v397_v48 = vadd.f32 %v396_v47, %v291_v44 }
 0x130   : > { %v385_v49 = vpop.f32.mrf.mxu1 }
 0x131   : > { %v734_v50 = vmul.f32 -1.442695, %v397_v48 }
 0x133   : > { %867 = vpow2.f32 %v734_v50 }
 0x136   : > { %v398_v51 = vpop.f32.mrf.mxu2 }
 0x139   : > { %v868_v52 = vpop.eup %867 }
 0x13a   : > { %v404_v53 = vadd.f32 1.0, %v868_v52 }
 0x13c   : > { %869 = vrcp.f32 %v404_v53  ;;  %v416_v60 = vand.u32 2147483648, %v404_v53  ;;  %v414_v63 = vand.u32 2147483647, %v404_v53  ;;  %vm410_vm1 = vweird.f32 %v404_v53 }
 0x13e   : > { %v417_v1 = vor.u32 1.1754944e-38, %v416_v60  ;;  %vm415_vm3 = vcmp.eq.f32.partialorder %v414_v63, 8.507059e+37 }
 0x142   : > { %v870_v55 = vpop.eup %869 }
 0x143   : > { %v406_v58 = vmul.f32 %v870_v55, %v404_v53  ;;  %vm411_vm0 = vweird.f32 %v870_v55 }
 0x144   : > { %vm412_vm2 = vmor %vm410_vm1, %vm411_vm0 }
 0x145   : > { %v407_v59 = vsub.f32 1.0, %v406_v58 }
 0x147   : > { %v408_v62 = vmul.f32 %v870_v55, %v407_v59 }
 0x149   : > { %v409_v0 = vadd.f32 %v870_v55, %v408_v62 }
 0x14b   : > { %v413_v3 = vsel %vm412_vm2, %v870_v55, %v409_v0 }
 0x14c   : > { %v418_v4 = vsel %vm415_vm3, %v417_v1, %v413_v3 }
 0x14d   : > { %v421_v5 = vmul.f32 %v420_v2, %v418_v4 }
 0x14f   : > { %v422_v6 = vadd.f32 %v421_v5, %v1046_v57  ;;  %v444_v57 = vperm.slane %v751_v8, 0 }
 0x151   : > { %v423_v7 = vpack.c.bf16 %v422_v6, %v422_v6 }
 0x153   : > { %536 = vmatmul.bf16.vlgmr.msra.gmra.mxu3 %v423_v7  ;;  %549 = vmatmul.bf16.vlgmr.msrb.gmra.mxu0 %v423_v7 }
 0x1d0   : > { %v550_v10 = vpop.f32.mrf.mxu0 }
 0x1d1   : > { %v551_v11 = vadd.f32 %v550_v10, %v445_v9 }
 0x1d3   : > { %v816_v12 = vmul.f32 -1.442695, %v551_v11 }
 0x1d5   : > { %871 = vpow2.f32 %v816_v12 }
 0x1d6   : > { %v537_v13 = vpop.f32.mrf.mxu3 }
 0x1d7   : > { %v538_v20 = vadd.f32 %v537_v13, %v444_v57 }
 0x1d8   : > { %v552_v14 = vpop.f32.mrf.mxu0 }
 0x1d9   : > { %v554_v23 = vmax.f32 %v538_v20, 0.0 }
 0x1db   : > { %v872_v15 = vpop.eup %871  ;;  %v574_v29 = vsub.f32 %v554_v23, %v422_v6 }
 0x1dc   : > { %v558_v16 = vadd.f32 1.0, %v872_v15 }
 0x1de   : > { %873 = vrcp.f32 %v558_v16  ;;  %v539_v17 = vpop.f32.mrf.mxu3  ;;  %v570_v22 = vand.u32 2147483648, %v558_v16  ;;  %v568_v25 = vand.u32 2147483647, %v558_v16  ;;  %vm564_vm5 = vweird.f32 %v558_v16 }
 0x1e0   : > { %v571_v27 = vor.u32 1.1754944e-38, %v570_v22  ;;  %vm569_vm7 = vcmp.eq.f32.partialorder %v568_v25, 8.507059e+37 }
 0x1e4   : > { %v874_v18 = vpop.eup %873 }
 0x1e5   : > { %v560_v19 = vmul.f32 %v874_v18, %v558_v16  ;;  %vm565_vm4 = vweird.f32 %v874_v18 }
 0x1e6   : > { %vm566_vm6 = vmor %vm564_vm5, %vm565_vm4 }
 0x1e7   : > { %v561_v21 = vsub.f32 1.0, %v560_v19 }
 0x1e9   : > { %v562_v24 = vmul.f32 %v874_v18, %v561_v21 }
 0x1eb   : > { %v563_v26 = vadd.f32 %v874_v18, %v562_v24 }
 0x1ed   : > { %v567_v28 = vsel %vm566_vm6, %v874_v18, %v563_v26 }
 0x1ee   : > { %v572_v30 = vsel %vm569_vm7, %v571_v27, %v567_v28 }
 0x1ef   : > { %v575_v31 = vmul.f32 %v574_v29, %v572_v30 }
 0x1f1   : > { %v576_v32 = vadd.f32 %v575_v31, %v422_v6 }
 0x1f3   : > { %577 = vst [vmem:[%s192_s28] sm:$0xff] %v576_v32 }
 0x1f4 PF: > { %s14_s15 = sadd.s32 1, %s881_s15  }
 0x1f5   : > { %p11_p4 = scmp.ge.s32.totalorder %s14_s15, 4  }
 0x1f7   :  { %13 = sbr.rel (!%p11_p4) target bundleno = 1 (0x1), region = 68 }

</bundles_post_ra>
